<compile_context>
chip_gen: v5e
topology: v5e:2x2
jax: 0.10.0
libtpu: 0.0.40
codegen_flags: <defaults>
</compile_context>

<pallas_src>
import functools

import jax
import jax.numpy as jnp
from jax.experimental import pallas as pl
from jax.experimental.pallas import tpu as pltpu

# ----- deterministic "config" (stands in for cfg; no checkpoint load) -------
T = 4.0              # cfg.T
LOG_TARGET = False   # cfg.LOG_TARGET (forward value identical either way)
# reduction='batchmean' (constructor default in the module)


def kldiv_kernel(y_s_ref, y_t_ref, out_ref, *, inv_t, true_b, ragged):
    # Upcast in-kernel so bf16 logits can be streamed at half the HBM bytes.
    y_s = y_s_ref[...].astype(jnp.float32) * inv_t
    y_t = y_t_ref[...].astype(jnp.float32) * inv_t

    if ragged:
        # Zero-mask out-of-bounds rows of the (partial) last block.  Masking
        # the INPUTS with a select means OOB Inf/NaN garbage can never poison
        # the sum, and a dead row gets identical student/teacher
        # distributions, so its KL term is exactly 0.  The mask is all-true on
        # full tiles, so applying it unconditionally costs two cheap VPU
        # selects on a mem/EUP-bound kernel and avoids value-producing
        # pl.when plumbing.
        tb_rows = y_s_ref.shape[0]
        rows = (jax.lax.broadcasted_iota(jnp.int32, (tb_rows, 1), 0)
                + pl.program_id(0) * tb_rows)
        valid = rows < true_b
        y_s = jnp.where(valid, y_s, 0.0)
        y_t = jnp.where(valid, y_t, 0.0)

    # Student: only log(sum exp) is needed (no student softmax materialized).
    m_s = jnp.max(y_s, axis=-1, keepdims=True)
    z_s = y_s - m_s
    s_s = jnp.sum(jnp.exp(z_s), axis=-1, keepdims=True)        # (TB, 1)

    # Teacher: one exp pass, reused for the normalizer and the weighted sum.
    m_t = jnp.max(y_t, axis=-1, keepdims=True)
    z_t = y_t - m_t
    e_t = jnp.exp(z_t)
    s_t = jnp.sum(e_t, axis=-1, keepdims=True)                  # (TB, 1)

    # row_kl = sum_c p_t*(lsm_t - lsm_s)
    #        = (sum_c e_t*(z_t - z_s)) / s_t - log(s_t) + log(s_s)
    # Only per-row (TB,1) divides / logs; no full-tile divide or broadcasts.
    num = jnp.sum(e_t * (z_t - z_s), axis=-1, keepdims=True)    # (TB, 1)
    row_kl = num / s_t + (jnp.log(s_s) - jnp.log(s_t))          # (TB, 1)

    partial = jnp.sum(row_kl)                                   # tile scalar
    # Lane/sublane-dense (8, 128) f32 store of the per-tile partial sum.
    out_ref[...] = jnp.broadcast_to(partial, out_ref.shape).astype(jnp.float32)


def _round_up(x, m):
    return ((x + m - 1) // m) * m


def _vmem_budgets():
    """Generation-aware (vmem_limit_bytes, tile_budget_bytes)."""
    try:
        cap = int(pltpu.get_tpu_info().vmem_capacity_bytes)
    except Exception:
        cap = 128 * 1024 * 1024          # v5e/v6e-class fallback
    # v5e/v6e (128 MiB physical) -> 64 MiB; v7x (64 MiB physical) -> ~46 MiB.
    vmem_limit = min(64 * 1024 * 1024, int(cap * 0.72))
    tile_budget = int(vmem_limit * 0.85)  # headroom for compiler scratch
    return vmem_limit, tile_budget


def _pick_tile_b(B, C, itemsize, tile_budget_bytes):
    """Largest batch tile whose double-buffered inputs + ~4 f32 full-tile
    temporaries fit the generation-aware VMEM budget."""
    sublane = 16 if itemsize < 4 else 8   # bf16 packs 16 rows / vreg
    # 2 inputs x 2 pipeline buffers at input dtype + ~4 live f32 full-tile temps.
    bytes_per_row = 2 * 2 * C * itemsize + 4 * C * 4
    tb = max(1, tile_budget_bytes // bytes_per_row)
    if B >= 2 * sublane:
        # Guarantee >= 2 grid tiles so both v7x TensorCores get work under
        # dimension_semantics=("parallel",); costs one ~0.35us step on 1-TC chips.
        tb = min(tb, _round_up((B + 1) // 2, sublane))
    if tb >= B:
        tb = B                            # single tile; block dim == full dim is legal
    else:
        tb = max(sublane, (tb // sublane) * sublane)
        tb = min(tb, B)                   # guard tiny-B / forced-minimum edge case
    return tb, sublane


def kldiv_loss(outputs, targets):
    """T^2 * KLDivLoss('batchmean')(log_softmax(outputs/T), softmax(targets/T))."""
    assert outputs.shape == targets.shape and outputs.ndim == 2
    B, C = outputs.shape
    itemsize = jnp.dtype(outputs.dtype).itemsize

    vmem_limit, tile_budget = _vmem_budgets()
    tb, sublane = _pick_tile_b(B, C, itemsize, tile_budget)
    num_tiles = pl.cdiv(B, tb)
    ragged = (B % tb) != 0

    kernel = functools.partial(
        kldiv_kernel, inv_t=1.0 / T, true_b=B, ragged=ragged)

    if tb <= 2 * sublane and num_tiles >= 4:
        # TB forced small (huge C): deepen input pipelining to hide DMA issue latency.
        in_spec = pl.BlockSpec((tb, C), lambda i: (i, 0),
                               pipeline_mode=pl.Buffered(3))
    else:
        in_spec = pl.BlockSpec((tb, C), lambda i: (i, 0))

    partials = pl.pallas_call(
        kernel,
        grid=(num_tiles,),
        in_specs=[in_spec, in_spec],
        out_specs=pl.BlockSpec((1, 8, 128), lambda i: (i, 0, 0)),
        out_shape=jax.ShapeDtypeStruct((num_tiles, 8, 128), jnp.float32),
        compiler_params=pltpu.CompilerParams(
            dimension_semantics=("parallel",),   # megacore sharding on v7x
            vmem_limit_bytes=vmem_limit),
    )(outputs, targets)

    # Tiny final reduction (num_tiles scalars) + batchmean over the TRUE batch.
    total = jnp.sum(partials[:, 0, 0])
    return (T * T) * total / B


def _kldiv_loss_ref(outputs, targets):
    """Pure-JAX reference matching the PyTorch module."""
    o = outputs.astype(jnp.float32) / T
    t = targets.astype(jnp.float32) / T
    lsm_s = jax.nn.log_softmax(o, axis=1)
    lsm_t = jax.nn.log_softmax(t, axis=1)
    p_t = jnp.exp(lsm_t)
    kl = jnp.sum(p_t * (lsm_t - lsm_s)) / outputs.shape[0]   # batchmean
    return T * T * kl


if __name__ == "__main__":
    key = jax.random.PRNGKey(0)

    # --- test 1: small, single tile, f32 ------------------------------------
    k1, k2, key = jax.random.split(key, 3)
    B, C = 8, 32
    y_s = jax.random.normal(k1, (B, C), dtype=jnp.float32)   # student logits
    y_t = jax.random.normal(k2, (B, C), dtype=jnp.float32)   # teacher logits
    out = jax.block_until_ready(kldiv_loss(y_s, y_t))
    ref = _kldiv_loss_ref(y_s, y_t)
    assert jnp.allclose(out, ref, rtol=1e-4, atol=1e-4), (out, ref)

    # --- test 2: ragged batch -> 2 tiles + in-kernel OOB masking, f32 --------
    k1, k2, key = jax.random.split(key, 3)
    B2, C2 = 20, 200
    y_s2 = jax.random.normal(k1, (B2, C2), dtype=jnp.float32)
    y_t2 = jax.random.normal(k2, (B2, C2), dtype=jnp.float32)
    out2 = jax.block_until_ready(kldiv_loss(y_s2, y_t2))
    ref2 = _kldiv_loss_ref(y_s2, y_t2)
    assert jnp.allclose(out2, ref2, rtol=1e-4, atol=1e-4), (out2, ref2)

    # --- test 3: bf16 logits (half the HBM traffic, upcast in-kernel) --------
    k1, k2, key = jax.random.split(key, 3)
    y_s3 = jax.random.normal(k1, (B, C), dtype=jnp.bfloat16)
    y_t3 = jax.random.normal(k2, (B, C), dtype=jnp.bfloat16)
    out3 = jax.block_until_ready(kldiv_loss(y_s3, y_t3))
    ref3 = _kldiv_loss_ref(y_s3, y_t3)
    assert jnp.allclose(out3, ref3, rtol=1e-4, atol=1e-4), (out3, ref3)

    # --- test 4: bf16, ragged batch, C not a multiple of 128 -----------------
    k1, k2, key = jax.random.split(key, 3)
    B4, C4 = 40, 136
    y_s4 = jax.random.normal(k1, (B4, C4), dtype=jnp.bfloat16)
    y_t4 = jax.random.normal(k2, (B4, C4), dtype=jnp.bfloat16)
    out4 = jax.block_until_ready(kldiv_loss(y_s4, y_t4))
    ref4 = _kldiv_loss_ref(y_s4, y_t4)
    assert jnp.allclose(out4, ref4, rtol=1e-4, atol=1e-4), (out4, ref4)

    print("KERNEL_OK")
</pallas_src>

<mosaic_0001>
module attributes {stable_mosaic.version = 11 : i64} {
  func.func @kldiv_kernel(%arg0: i32, %arg1: memref<8x32xf32, #tpu.memory_space<vmem>>, %arg2: memref<8x32xf32, #tpu.memory_space<vmem>>, %arg3: memref<1x8x128xf32, #tpu.memory_space<vmem>>) attributes {dimension_semantics = [#tpu.dimension_semantics<parallel>], iteration_bounds = array<i64: 1>, scalar_prefetch = 0 : i64, scratch_operands = 0 : i64, tpu.core_type = #tpu.core_type<tc>, window_params = [{transform_indices = @transform_0, window_bounds = array<i64: 8, 32>}, {transform_indices = @transform_1, window_bounds = array<i64: 8, 32>}, {transform_indices = @transform_2, window_bounds = array<i64: 1, 8, 128>}]} {
    %c0 = arith.constant 0 : index
    %c0_0 = arith.constant 0 : index
    %0 = vector.load %arg1[%c0, %c0_0] : memref<8x32xf32, #tpu.memory_space<vmem>>, vector<8x32xf32>
    %cst = arith.constant 2.500000e-01 : f32
    %1 = vector.broadcast %cst : f32 to vector<8x32xf32>
    %2 = arith.mulf %0, %1 : vector<8x32xf32>
    %c0_1 = arith.constant 0 : index
    %c0_2 = arith.constant 0 : index
    %3 = vector.load %arg2[%c0_1, %c0_2] : memref<8x32xf32, #tpu.memory_space<vmem>>, vector<8x32xf32>
    %cst_3 = arith.constant 2.500000e-01 : f32
    %4 = vector.broadcast %cst_3 : f32 to vector<8x32xf32>
    %5 = arith.mulf %3, %4 : vector<8x32xf32>
    %cst_4 = arith.constant dense<0xFF800000> : vector<8xf32>
    %6 = vector.multi_reduction <maximumf>, %2, %cst_4 [1] : vector<8x32xf32> to vector<8xf32>
    %7 = vector.shape_cast %6 : vector<8xf32> to vector<8x1xf32>
    %8 = vector.broadcast %7 : vector<8x1xf32> to vector<8x32xf32>
    %9 = arith.subf %2, %8 : vector<8x32xf32>
    %10 = math.exp %9 : vector<8x32xf32>
    %cst_5 = arith.constant dense<0.000000e+00> : vector<8xf32>
    %11 = vector.multi_reduction <add>, %10, %cst_5 [1] : vector<8x32xf32> to vector<8xf32>
    %12 = vector.shape_cast %11 : vector<8xf32> to vector<8x1xf32>
    %cst_6 = arith.constant dense<0xFF800000> : vector<8xf32>
    %13 = vector.multi_reduction <maximumf>, %5, %cst_6 [1] : vector<8x32xf32> to vector<8xf32>
    %14 = vector.shape_cast %13 : vector<8xf32> to vector<8x1xf32>
    %15 = vector.broadcast %14 : vector<8x1xf32> to vector<8x32xf32>
    %16 = arith.subf %5, %15 : vector<8x32xf32>
    %17 = math.exp %16 : vector<8x32xf32>
    %cst_7 = arith.constant dense<0.000000e+00> : vector<8xf32>
    %18 = vector.multi_reduction <add>, %17, %cst_7 [1] : vector<8x32xf32> to vector<8xf32>
    %19 = vector.shape_cast %18 : vector<8xf32> to vector<8x1xf32>
    %20 = arith.subf %16, %9 : vector<8x32xf32>
    %21 = arith.mulf %17, %20 : vector<8x32xf32>
    %cst_8 = arith.constant dense<0.000000e+00> : vector<8xf32>
    %22 = vector.multi_reduction <add>, %21, %cst_8 [1] : vector<8x32xf32> to vector<8xf32>
    %23 = vector.shape_cast %22 : vector<8xf32> to vector<8x1xf32>
    %24 = arith.divf %23, %19 : vector<8x1xf32>
    %25 = math.log %12 : vector<8x1xf32>
    %26 = math.log %19 : vector<8x1xf32>
    %27 = arith.subf %25, %26 : vector<8x1xf32>
    %28 = arith.addf %24, %27 : vector<8x1xf32>
    %29 = vector.shape_cast %28 : vector<8x1xf32> to vector<1x8x1xf32>
    %cst_9 = arith.constant dense<0.000000e+00> : vector<1xf32>
    %30 = vector.multi_reduction <add>, %29, %cst_9 [1, 2] : vector<1x8x1xf32> to vector<1xf32>
    %31 = vector.shape_cast %30 : vector<1xf32> to vector<1x1x1xf32>
    %32 = vector.extract %31[0, 0, 0] : f32 from vector<1x1x1xf32>
    %33 = vector.broadcast %32 : f32 to vector<1x8x128xf32>
    %c0_10 = arith.constant 0 : index
    %c0_11 = arith.constant 0 : index
    %c0_12 = arith.constant 0 : index
    %34 = vector.load %arg3[%c0_10, %c0_11, %c0_12] : memref<1x8x128xf32, #tpu.memory_space<vmem>>, vector<1x8x128xf32>
    tpu.vector_store %arg3[%c0_10, %c0_11, %c0_12], %33 {strides = array<i32>} : memref<1x8x128xf32, #tpu.memory_space<vmem>>, vector<1x8x128xf32>,
    return
  }
  func.func @transform_0(%arg0: i32) -> (i32, i32) {
    %c0_i32 = arith.constant 0 : i32
    %c0_i32_0 = arith.constant 0 : i32
    return %arg0, %c0_i32 : i32, i32
  }
  func.func @transform_1(%arg0: i32) -> (i32, i32) {
    %c0_i32 = arith.constant 0 : i32
    %c0_i32_0 = arith.constant 0 : i32
    return %arg0, %c0_i32 : i32, i32
  }
  func.func @transform_2(%arg0: i32) -> (i32, i32, i32) {
    %c0_i32 = arith.constant 0 : i32
    %c0_i32_0 = arith.constant 0 : i32
    %c0_i32_1 = arith.constant 0 : i32
    return %arg0, %c0_i32, %c0_i32_0 : i32, i32, i32
  }
}

</mosaic_0001>

<bundles_post_ra>
// kernel: tpu_custom_call.1
= control target key start
LH: loop header
LB: loop body
LE: loop exit
PB: predicated region body
PF: predicated region fallthrough
CT: control target
= control target key end

     0   :  { %7 = vsyncpa [#allocation3], 0  ;;  %s245_s0 = inlined_call_operand.hbm [shape: f32[8,32], index: 0, kind: input, shape index: {}]   ;;  %s246_s1 = inlined_call_operand.hbm [shape: f32[8,32], index: 1, kind: input, shape index: {}]   ;;  %s247_s2 = inlined_call_operand.hbm [shape: f32[1,8,128], index: 2, kind: output, shape index: {}]  }
   0x1   :  { %8 = vsyncpa [#allocation6], 0 }
   0x2   :  { %9 = vsyncpa [#allocation4], 0  ;;  %s15_s11 = sshll.u32 %s245_s0, 4  ;;  %s213_s12 = smov [#allocation2]   ;;  %s16_s11 = int_to_ptr.hbm [resolvable:$true] %s15_s11 }
   0x3   :  { %s17_s13 = sshll.u32 %s213_s12, 4  ;;  %s26_s16 = sshll.u32 %s246_s1, 4  ;;  %s18_s13 = int_to_ptr.vmem [resolvable:$true] %s17_s13  ;;  %s27_s16 = int_to_ptr.hbm [resolvable:$true] %s26_s16 }
   0x4   :  { %20 = dma.hbm_to_vmem [thread:$0]  %s16_s11, 128, %s18_s13, [#allocation3]  }
   0x5   :  { %s214_s17 = smov [#allocation5]  }
   0x6   :  { %s28_s18 = sshll.u32 %s214_s17, 4  ;;  %s29_s18 = int_to_ptr.vmem [resolvable:$true] %s28_s18 }
   0x7   :  { %31 = dma.hbm_to_vmem [thread:$0]  %s27_s16, 128, %s29_s18, [#allocation6]  }
   0x8   :  { %207 = dma.done.wait [#allocation3], 128  }
   0x9   :  { %208 = vsyncadd [#allocation3], 4294967168 }
   0xa   :  { %209 = dma.done.wait [#allocation6], 128  }
   0xb   :  { %210 = vsyncadd [#allocation6], 4294967168  ;;  %v42_v0 = vld [vmem:[#allocation5] sm:$0xff]  ;;  %vm44_vm0 = vcmask 261120   ;;  %v40_v2 = vld [vmem:[#allocation2] sm:$0xff]  ;;  %vm89_vm5 = vcmask 7168  }
   0xc   :  { %v43_v1 = vmul.f32 0.25, %v42_v0  ;;  %v41_v4 = vmul.f32 0.25, %v40_v2  ;;  %s215_s0 = smov [#allocation7]   ;;  %s109_s21 = sshll.u32 %s247_s2, 4  ;;  %s110_s21 = int_to_ptr.hbm [resolvable:$true] %s109_s21 }
   0xd   :  { %s107_s1 = sshll.u32 %s215_s0, 4  ;;  %s108_s1 = int_to_ptr.vmem [resolvable:$true] %s107_s1 }
   0xe   :  { %v54_v3 = vsel %vm44_vm0, %v43_v1, -inf  ;;  %v45_v5 = vsel %vm44_vm0, %v41_v4, -inf }
   0xf   :  { %55 = vmax.xlane.f32.xlu0 %v54_v3 }
  0x17   :  { %46 = vmax.xlane.f32.xlu0 %v45_v5 }
  0x82   :  { %v56_v6 = vpop.xlane.xlu0 %55 }
  0x83   :  { %v57_v7 = vsub.f32 %v43_v1, %v56_v6 }
  0x85   :  { %v58_v8 = vmul.f32 1.442695, %v57_v7 }
  0x87   :  { %125 = vpow2.f32 %v58_v8 }
  0x8a   :  { %v47_v9 = vpop.xlane.xlu0 %46 }
  0x8b   :  { %v48_v10 = vsub.f32 %v41_v4, %v47_v9 }
  0x8d   :  { %v126_v11 = vpop.eup %125  ;;  %v49_v12 = vmul.f32 1.442695, %v48_v10  ;;  %v63_v13 = vsub.f32 %v57_v7, %v48_v10 }
  0x8e   :  { %v60_v14 = vsel %vm44_vm0, %v126_v11, 0.0 }
  0x8f   :  { %127 = vpow2.f32 %v49_v12  ;;  %61 = vadd.xlane.f32.xlu1 %v60_v14  ;;  %v64_v15 = vmul.f32 %v126_v11, %v63_v13 }
  0x91   :  { %v65_v16 = vsel %vm44_vm0, %v64_v15, 0.0 }
  0x92   :  { %66 = vadd.xlane.f32.xlu2 %v65_v16 }
  0x95   :  { %v128_v17 = vpop.eup %127 }
  0x96   :  { %v51_v18 = vsel %vm44_vm0, %v128_v17, 0.0 }
  0x97   :  { %52 = vadd.xlane.f32.xlu1 %v51_v18 }
 0x102   :  { %v62_v19 = vpop.xlane.xlu1 %61 }
 0x103   :  { %129 = vrcp.f32 %v62_v19  ;;  %v79_v24 = vand.u32 2147483648, %v62_v19  ;;  %v77_v26 = vand.u32 2147483647, %v62_v19  ;;  %vm73_vm2 = vweird.f32 %v62_v19 }
 0x104   :  { %131 = vlog2.f32 %v62_v19 }
 0x105   :  { %v80_v30 = vor.u32 1.1754944e-38, %v79_v24  ;;  %vm78_vm4 = vcmp.eq.f32.partialorder %v77_v26, 8.507059e+37  ;;  %v67_v35 = vpop.xlane.xlu2 %66 }
 0x109   :  { %v130_v20 = vpop.eup %129 }
 0x10a   :  { %v69_v21 = vmul.f32 %v130_v20, %v62_v19  ;;  %v53_v22 = vpop.xlane.xlu1 %52  ;;  %vm74_vm1 = vweird.f32 %v130_v20  ;;  %v132_v27 = vpop.eup %131 }
 0x10b   :  { %133 = vlog2.f32 %v53_v22  ;;  %vm75_vm3 = vmor %vm73_vm2, %vm74_vm1  ;;  %v86_v32 = vmul.f32 0.6931472, %v132_v27 }
 0x10c   :  { %v70_v23 = vsub.f32 1.0, %v69_v21 }
 0x10e   :  { %v71_v25 = vmul.f32 %v130_v20, %v70_v23 }
 0x110   :  { %v72_v28 = vadd.f32 %v130_v20, %v71_v25 }
 0x111   :  { %v134_v29 = vpop.eup %133 }
 0x112   :  { %v76_v31 = vsel %vm75_vm3, %v130_v20, %v72_v28  ;;  %v84_v33 = vmul.f32 0.6931472, %v134_v29 }
 0x113   :  { %v81_v34 = vsel %vm78_vm4, %v80_v30, %v76_v31 }
 0x114   :  { %v82_v36 = vmul.f32 %v81_v34, %v67_v35  ;;  %v87_v37 = vsub.f32 %v84_v33, %v86_v32 }
 0x116   :  { %v88_v38 = vadd.f32 %v87_v37, %v82_v36 }
 0x118   :  { %v90_v39 = vsel %vm89_vm5, %v88_v38, 0.0 }
 0x119   :  { %91 = vadd.xlane.f32.xlu2 %v90_v39 }
 0x18c   :  { %v92_v40 = vpop.xlane.xlu2 %91 }
 0x18d   :  { %v93_v41 = vrot.slane %v92_v40, 4 }
 0x18f   :  { %v94_v42 = vadd.f32 %v93_v41, %v92_v40 }
 0x191   :  { %v95_v43 = vrot.slane %v94_v42, 2 }
 0x193   :  { %v96_v44 = vadd.f32 %v95_v43, %v94_v42 }
 0x195   :  { %v97_v45 = vrot.slane %v96_v44, 1 }
 0x197   :  { %v98_v46 = vadd.f32 %v97_v45, %v96_v44 }
 0x199   :  { %120 = vpush %v98_v46 }
 0x1ca   :  { %s121_s22 = spop %120 }
 0x1cb   :  { %v100_v47 = vstv %s121_s22 }
 0x1cc   :  { %101 = vst [vmem:[#allocation7] sm:$0xff] %v100_v47 }
 0x1cd   :  { %112 = dma.vmem_to_hbm [thread:$0]  %s108_s1, 128, %s110_s21, [#allocation4]  }
 0x1ce   :  { %211 = dma.done.wait [#allocation4], 128  }
 0x1cf   :  { %212 = vsyncadd [#allocation4], 4294967168 }
 0x1d0   :  { %117 = vsyncpa [#allocation3], 1 }
 0x1d1   :  { %118 = vsyncpa [#allocation6], 1 }
 0x1d2   :  { %119 = vsyncpa [#allocation4], 1 }

</bundles_post_ra>
